<compile_context>
chip_gen: v7x
topology: tpu7x:2x2x1
jax: 0.10.0
libtpu: 0.0.40
codegen_flags: <defaults>
</compile_context>

<pallas_src>
import jax
import jax.numpy as jnp
from jax.experimental import pallas as pl
from jax.experimental.pallas import tpu as pltpu


_OUT_SUB = 8            # sublane rows of each shard's resident output block
_OUT_LANE = 128         # lane width of the output block (lane-dense stores)
_VMEM_TILE_BUDGET = 12 * 1024 * 1024   # double-buffered tile budget (safe on v5e/v6e/v7x)


def _choose_block_rows(total_rows, row_width, itemsize, max_block_rows=None):
    """Row-tile size keeping the double-buffered VMEM footprint ~12 MiB."""
    lane_w = max(_OUT_LANE, -(-row_width // _OUT_LANE) * _OUT_LANE)
    per_row = 2 * (lane_w * max(int(itemsize), 1) + _OUT_LANE * 4)  # 2x = dbl buffer
    r = max(8, min(4096, (_VMEM_TILE_BUDGET // per_row) // 8 * 8))
    need = max(8, -(-total_rows // 8) * 8)
    block_rows = min(r, need)
    if max_block_rows is not None:
        block_rows = min(block_rows, max(8, (max_block_rows // 8) * 8))
    return block_rows


def _seg_butterfly(x, lane, seg, op):
    """Segmented reduction over aligned lane groups of size `seg` (power of 2).

    XOR-butterfly: each step pairs lane l with lane l^step via two pltpu.rolls
    plus a select; after log2(seg) steps every lane holds its group's
    reduction.  Rolls ride the XLU, so the EUP (exp/log) slot stays free."""
    w = x.shape[-1]
    step = 1
    while step < seg:
        up = pltpu.roll(x, shift=w - step, axis=1)   # lane l <- value of lane l + step
        dn = pltpu.roll(x, shift=step, axis=1)       # lane l <- value of lane l - step
        x = op(x, jnp.where((lane & step) == 0, up, dn))
        step *= 2
    return x


def _make_packed_kernel(n_prows, steps, block_rows, pack, class_num):
    width = pack * class_num           # == 128: fully lane-dense tiles
    inv_c = 1.0 / class_num            # exact (class_num is a power of two)

    def kernel(pred_ref, tgt_ref, out_ref):
        s = pl.program_id(0)           # shard (parallel axis)
        i = pl.program_id(1)           # row-tile step within the shard

        @pl.when(i == 0)
        def _init():
            out_ref[...] = jnp.zeros_like(out_ref)

        x = pred_ref[...].astype(jnp.float32)        # (R, 128); cast after the load
        tgt = tgt_ref[...]                           # (R, pack) int32 target lane ids
        r = x.shape[0]
        lane = jax.lax.broadcasted_iota(jnp.int32, (r, width), 1)

        # Per-original-row max / sum-exp, replicated across that row's C lanes.
        m = _seg_butterfly(x, lane, class_num, jnp.maximum)
        e = jnp.exp(x - m)                                           # dense EUP exp
        ssum = _seg_butterfly(e, lane, class_num, jnp.add)
        lse = m + jnp.log(ssum)

        # Picked logit: lane id == host-precomputed target lane id of its group.
        pick = lane == tgt[:, 0:1]
        for p in range(1, pack):
            pick = jnp.logical_or(pick, lane == tgt[:, p:p + 1])

        # Mask packed rows beyond the real extent (select: pred is NOT padded in
        # HBM, so the edge block's tail may hold stale/NaN data).
        blk = s * steps + i
        prow = blk * block_rows + jax.lax.broadcasted_iota(jnp.int32, (r, 1), 0)
        valid = prow < n_prows
        lse = jnp.where(valid, lse, 0.0)
        picked = jnp.where(jnp.logical_and(valid, pick), x, 0.0)

        # Per-lane partial sums; each row's lse is replicated class_num times,
        # so scale by 1/class_num.  Final cross-lane reduce happens on the host.
        col = jnp.sum(lse * inv_c - picked, axis=0, keepdims=True)   # (1, 128)
        out_ref[...] += col

    return kernel


def _make_plain_kernel(n_rows, steps, block_rows):
    """Fallback for class dims that can't be lane-packed (non power-of-two /
    very small / very large, or N not divisible by the pack factor)."""
    def kernel(pred_ref, lbl_ref, out_ref):
        s = pl.program_id(0)
        i = pl.program_id(1)

        @pl.when(i == 0)
        def _init():
            out_ref[...] = jnp.zeros_like(out_ref)

        x = pred_ref[...].astype(jnp.float32)        # (R, C)
        lbl = lbl_ref[...]                           # (R, 1) int32
        r, c = x.shape

        m = jnp.max(x, axis=-1, keepdims=True)
        lse = m + jnp.log(jnp.sum(jnp.exp(x - m), axis=-1, keepdims=True))
        cls = jax.lax.broadcasted_iota(jnp.int32, (r, c), 1)
        picked = jnp.sum(jnp.where(cls == lbl, x, 0.0), axis=-1, keepdims=True)
        nll = lse - picked

        blk = s * steps + i
        row = blk * block_rows + jax.lax.broadcasted_iota(jnp.int32, (r, 1), 0)
        nll = jnp.where(row < n_rows, nll, 0.0)

        out_ref[...] += jnp.sum(nll, keepdims=True)   # (1,1) -> (8,128) broadcast

    return kernel


def classifier_loss(pred, label, task_num, class_num, *,
                    num_shards=1, max_block_rows=None):
    """pred: (B, task_num*class_num) float (any dtype); label: (B, task_num) int."""
    batch = pred.shape[0]
    n_rows = batch * task_num
    itemsize = jnp.dtype(pred.dtype).itemsize

    packed = (
        8 <= class_num <= 64
        and (class_num & (class_num - 1)) == 0
        and n_rows % (128 // class_num) == 0
    )

    if packed:
        pack = 128 // class_num
        width = pack * class_num                      # 128
        total_rows = n_rows // pack
        pred2 = jnp.reshape(pred, (total_rows, width))          # free, row-major
        lbl_flat = jnp.reshape(label, (n_rows,)).astype(jnp.int32)
        grp_off = (jnp.arange(n_rows, dtype=jnp.int32) % pack) * class_num
        aux = jnp.reshape(lbl_flat + grp_off, (total_rows, pack))
        aux_width = pack
    else:
        pack = 1
        width = class_num
        total_rows = n_rows
        pred2 = jnp.reshape(pred, (total_rows, class_num))
        aux = jnp.reshape(label, (total_rows, 1)).astype(jnp.int32)
        aux_width = 1

    block_rows = _choose_block_rows(total_rows, width, itemsize, max_block_rows)
    nblocks = pl.cdiv(total_rows, block_rows)
    steps = pl.cdiv(nblocks, num_shards)

    # Pad only the tiny label/target array so its blocks are always in-bounds;
    # pred streams unpadded (edge block handled by the in-kernel row mask).
    lbl_rows = nblocks * block_rows
    if lbl_rows != total_rows:
        aux = jnp.pad(aux, ((0, lbl_rows - total_rows), (0, 0)))

    if packed:
        kernel = _make_packed_kernel(total_rows, steps, block_rows, pack, class_num)
    else:
        kernel = _make_plain_kernel(total_rows, steps, block_rows)

    last_block = nblocks - 1

    def row_map(s, i):
        # Clamp so an over-provisioned shard never requests a fully OOB block;
        # the in-kernel row mask zeroes any duplicated rows.
        return (jnp.minimum(s * steps + i, last_block), 0)

    cost = pl.CostEstimate(
        flops=int(8 * n_rows * class_num),
        transcendentals=int(n_rows * class_num + n_rows),
        bytes_accessed=int(n_rows * class_num * itemsize + n_rows * 4
                           + num_shards * _OUT_SUB * _OUT_LANE * 4),
    )

    out = pl.pallas_call(
        kernel,
        out_shape=jax.ShapeDtypeStruct((num_shards * _OUT_SUB, _OUT_LANE),
                                       jnp.float32),
        grid_spec=pltpu.PrefetchScalarGridSpec(
            num_scalar_prefetch=0,
            grid=(num_shards, steps),
            in_specs=[
                pl.BlockSpec((block_rows, width), row_map),
                pl.BlockSpec((block_rows, aux_width), row_map),
            ],
            out_specs=pl.BlockSpec((_OUT_SUB, _OUT_LANE), lambda s, i: (s, 0)),
        ),
        compiler_params=pltpu.CompilerParams(
            dimension_semantics=("parallel", "arbitrary"),
            vmem_limit_bytes=32 * 1024 * 1024,
        ),
        cost_estimate=cost,
    )(pred2, aux)

    blocks = out.reshape(num_shards, _OUT_SUB, _OUT_LANE)
    if packed:
        total = jnp.sum(blocks[:, 0, :])   # per-lane partials (sublanes identical)
    else:
        total = jnp.sum(blocks[:, 0, 0])   # scalar partial replicated per block
    return total / n_rows


def _reference_loss(pred, label, task_num, class_num):
    """Pure-JAX reference mirroring torch.nn.CrossEntropyLoss semantics."""
    batch = pred.shape[0]
    pred_mat = jnp.reshape(pred, (batch, task_num, class_num)).astype(jnp.float32)
    loss = 0.0
    for t in range(task_num):
        logits = pred_mat[:, t, :]
        logp = jax.nn.log_softmax(logits, axis=-1)
        nll = -jnp.take_along_axis(logp, label[:, t][:, None], axis=-1)[:, 0]
        loss = loss + jnp.mean(nll) / task_num
    return loss


if __name__ == "__main__":
    key = jax.random.PRNGKey(0)
    k1, k2, k3, k4, k5, k6 = jax.random.split(key, 6)

    # Test 1: module-like shapes, C=32 -> lane-packed path (P=4), single tile.
    task_num, class_num, batch = 4, 32, 8
    pred = jax.random.normal(k1, (batch, task_num * class_num), jnp.float32)
    label = jax.random.randint(k2, (batch, task_num), 0, class_num, jnp.int32)
    loss = jax.block_until_ready(classifier_loss(pred, label, task_num, class_num))
    ref = jax.block_until_ready(_reference_loss(pred, label, task_num, class_num))
    assert jnp.allclose(loss, ref, atol=1e-5, rtol=1e-5), (loss, ref)

    # Test 2: odd sizes (C=10) -> fallback path, multi-step grid, unpadded pred,
    # edge-block row masking.
    t2, c2, b2 = 3, 10, 37
    pred2 = jax.random.normal(k3, (b2, t2 * c2), jnp.float32) * 3.0
    label2 = jax.random.randint(k4, (b2, t2), 0, c2, jnp.int32)
    loss2 = jax.block_until_ready(
        classifier_loss(pred2, label2, t2, c2, max_block_rows=8))
    ref2 = jax.block_until_ready(_reference_loss(pred2, label2, t2, c2))
    assert jnp.allclose(loss2, ref2, atol=1e-5, rtol=1e-5), (loss2, ref2)

    # Test 3: bf16 input stays bf16 over HBM; cast happens inside the kernel.
    pred_bf16 = pred.astype(jnp.bfloat16)
    loss3 = jax.block_until_ready(
        classifier_loss(pred_bf16, label, task_num, class_num))
    ref3 = jax.block_until_ready(
        _reference_loss(pred_bf16.astype(jnp.float32), label, task_num, class_num))
    assert jnp.allclose(loss3, ref3, atol=1e-3, rtol=1e-3), (loss3, ref3)

    # Test 4: packed path with multiple grid steps + partial edge block.
    t4, c4, b4 = 4, 32, 52
    pred4 = jax.random.normal(k5, (b4, t4 * c4), jnp.float32)
    label4 = jax.random.randint(k6, (b4, t4), 0, c4, jnp.int32)
    loss4 = jax.block_until_ready(
        classifier_loss(pred4, label4, t4, c4, max_block_rows=16))
    ref4 = jax.block_until_ready(_reference_loss(pred4, label4, t4, c4))
    assert jnp.allclose(loss4, ref4, atol=1e-5, rtol=1e-5), (loss4, ref4)

    # Test 5: two shards (v7x-style split) over the same packed workload.
    loss5 = jax.block_until_ready(
        classifier_loss(pred4, label4, t4, c4, num_shards=2, max_block_rows=16))
    assert jnp.allclose(loss5, ref4, atol=1e-5, rtol=1e-5), (loss5, ref4)

    print("KERNEL_OK")
</pallas_src>

<mosaic_0001>
module attributes {stable_mosaic.version = 11 : i64} {
  func.func @kernel(%arg0: i32, %arg1: i32, %arg2: memref<8x128xf32, #tpu.memory_space<vmem>>, %arg3: memref<8x4xi32, #tpu.memory_space<vmem>>, %arg4: memref<8x128xf32, #tpu.memory_space<vmem>>) attributes {dimension_semantics = [#tpu.dimension_semantics<parallel>, #tpu.dimension_semantics<arbitrary>], iteration_bounds = array<i64: 1, 1>, scalar_prefetch = 0 : i64, scratch_operands = 0 : i64, tpu.core_type = #tpu.core_type<tc>, window_params = [{transform_indices = @transform_0, window_bounds = array<i64: 8, 128>}, {transform_indices = @transform_1, window_bounds = array<i64: 8, 4>}, {transform_indices = @transform_2, window_bounds = array<i64: 8, 128>}]} {
    %c0_i32 = arith.constant 0 : i32
    %0 = arith.cmpi eq, %arg1, %c0_i32 : i32
    %1 = arith.extui %0 : i1 to i32
    %c0_i32_0 = arith.constant 0 : i32
    %2 = arith.cmpi ne, %1, %c0_i32_0 : i32
    scf.if %2 {
      %cst_44 = arith.constant 0.000000e+00 : f32
      %130 = vector.broadcast %cst_44 : f32 to vector<8x128xf32>
      %c0_45 = arith.constant 0 : index
      %c0_46 = arith.constant 0 : index
      %131 = vector.load %arg4[%c0_45, %c0_46] : memref<8x128xf32, #tpu.memory_space<vmem>>, vector<8x128xf32>
      tpu.vector_store %arg4[%c0_45, %c0_46], %130 {strides = array<i32>} : memref<8x128xf32, #tpu.memory_space<vmem>>, vector<8x128xf32>,
    } else {
    }
    %c0 = arith.constant 0 : index
    %c0_1 = arith.constant 0 : index
    %3 = vector.load %arg2[%c0, %c0_1] : memref<8x128xf32, #tpu.memory_space<vmem>>, vector<8x128xf32>
    %c0_2 = arith.constant 0 : index
    %c0_3 = arith.constant 0 : index
    %4 = vector.load %arg3[%c0_2, %c0_3] : memref<8x4xi32, #tpu.memory_space<vmem>>, vector<8x4xi32>
    %5 = tpu.iota {dimensions = array<i32: 1>} : vector<8x128xi32>
    %c127_i32 = arith.constant 127 : i32
    %6 = tpu.dynamic_rotate %3 by %c127_i32 dim 1 : vector<8x128xf32>, i32 -> vector<8x128xf32>
    %c1_i32 = arith.constant 1 : i32
    %7 = tpu.dynamic_rotate %3 by %c1_i32 dim 1 : vector<8x128xf32>, i32 -> vector<8x128xf32>
    %c1_i32_4 = arith.constant 1 : i32
    %8 = vector.broadcast %c1_i32_4 : i32 to vector<8x128xi32>
    %9 = arith.andi %5, %8 : vector<8x128xi32>
    %c0_i32_5 = arith.constant 0 : i32
    %10 = vector.broadcast %c0_i32_5 : i32 to vector<8x128xi32>
    %11 = arith.cmpi eq, %9, %10 : vector<8x128xi32>
    %12 = arith.select %11, %6, %7 : vector<8x128xi1>, vector<8x128xf32>
    %13 = arith.maximumf %3, %12 : vector<8x128xf32>
    %c126_i32 = arith.constant 126 : i32
    %14 = tpu.dynamic_rotate %13 by %c126_i32 dim 1 : vector<8x128xf32>, i32 -> vector<8x128xf32>
    %c2_i32 = arith.constant 2 : i32
    %15 = tpu.dynamic_rotate %13 by %c2_i32 dim 1 : vector<8x128xf32>, i32 -> vector<8x128xf32>
    %c2_i32_6 = arith.constant 2 : i32
    %16 = vector.broadcast %c2_i32_6 : i32 to vector<8x128xi32>
    %17 = arith.andi %5, %16 : vector<8x128xi32>
    %c0_i32_7 = arith.constant 0 : i32
    %18 = vector.broadcast %c0_i32_7 : i32 to vector<8x128xi32>
    %19 = arith.cmpi eq, %17, %18 : vector<8x128xi32>
    %20 = arith.select %19, %14, %15 : vector<8x128xi1>, vector<8x128xf32>
    %21 = arith.maximumf %13, %20 : vector<8x128xf32>
    %c124_i32 = arith.constant 124 : i32
    %22 = tpu.dynamic_rotate %21 by %c124_i32 dim 1 : vector<8x128xf32>, i32 -> vector<8x128xf32>
    %c4_i32 = arith.constant 4 : i32
    %23 = tpu.dynamic_rotate %21 by %c4_i32 dim 1 : vector<8x128xf32>, i32 -> vector<8x128xf32>
    %c4_i32_8 = arith.constant 4 : i32
    %24 = vector.broadcast %c4_i32_8 : i32 to vector<8x128xi32>
    %25 = arith.andi %5, %24 : vector<8x128xi32>
    %c0_i32_9 = arith.constant 0 : i32
    %26 = vector.broadcast %c0_i32_9 : i32 to vector<8x128xi32>
    %27 = arith.cmpi eq, %25, %26 : vector<8x128xi32>
    %28 = arith.select %27, %22, %23 : vector<8x128xi1>, vector<8x128xf32>
    %29 = arith.maximumf %21, %28 : vector<8x128xf32>
    %c120_i32 = arith.constant 120 : i32
    %30 = tpu.dynamic_rotate %29 by %c120_i32 dim 1 : vector<8x128xf32>, i32 -> vector<8x128xf32>
    %c8_i32 = arith.constant 8 : i32
    %31 = tpu.dynamic_rotate %29 by %c8_i32 dim 1 : vector<8x128xf32>, i32 -> vector<8x128xf32>
    %c8_i32_10 = arith.constant 8 : i32
    %32 = vector.broadcast %c8_i32_10 : i32 to vector<8x128xi32>
    %33 = arith.andi %5, %32 : vector<8x128xi32>
    %c0_i32_11 = arith.constant 0 : i32
    %34 = vector.broadcast %c0_i32_11 : i32 to vector<8x128xi32>
    %35 = arith.cmpi eq, %33, %34 : vector<8x128xi32>
    %36 = arith.select %35, %30, %31 : vector<8x128xi1>, vector<8x128xf32>
    %37 = arith.maximumf %29, %36 : vector<8x128xf32>
    %c112_i32 = arith.constant 112 : i32
    %38 = tpu.dynamic_rotate %37 by %c112_i32 dim 1 : vector<8x128xf32>, i32 -> vector<8x128xf32>
    %c16_i32 = arith.constant 16 : i32
    %39 = tpu.dynamic_rotate %37 by %c16_i32 dim 1 : vector<8x128xf32>, i32 -> vector<8x128xf32>
    %c16_i32_12 = arith.constant 16 : i32
    %40 = vector.broadcast %c16_i32_12 : i32 to vector<8x128xi32>
    %41 = arith.andi %5, %40 : vector<8x128xi32>
    %c0_i32_13 = arith.constant 0 : i32
    %42 = vector.broadcast %c0_i32_13 : i32 to vector<8x128xi32>
    %43 = arith.cmpi eq, %41, %42 : vector<8x128xi32>
    %44 = arith.select %43, %38, %39 : vector<8x128xi1>, vector<8x128xf32>
    %45 = arith.maximumf %37, %44 : vector<8x128xf32>
    %46 = arith.subf %3, %45 : vector<8x128xf32>
    %47 = math.exp %46 : vector<8x128xf32>
    %c127_i32_14 = arith.constant 127 : i32
    %48 = tpu.dynamic_rotate %47 by %c127_i32_14 dim 1 : vector<8x128xf32>, i32 -> vector<8x128xf32>
    %c1_i32_15 = arith.constant 1 : i32
    %49 = tpu.dynamic_rotate %47 by %c1_i32_15 dim 1 : vector<8x128xf32>, i32 -> vector<8x128xf32>
    %c1_i32_16 = arith.constant 1 : i32
    %50 = vector.broadcast %c1_i32_16 : i32 to vector<8x128xi32>
    %51 = arith.andi %5, %50 : vector<8x128xi32>
    %c0_i32_17 = arith.constant 0 : i32
    %52 = vector.broadcast %c0_i32_17 : i32 to vector<8x128xi32>
    %53 = arith.cmpi eq, %51, %52 : vector<8x128xi32>
    %54 = arith.select %53, %48, %49 : vector<8x128xi1>, vector<8x128xf32>
    %55 = arith.addf %47, %54 : vector<8x128xf32>
    %c126_i32_18 = arith.constant 126 : i32
    %56 = tpu.dynamic_rotate %55 by %c126_i32_18 dim 1 : vector<8x128xf32>, i32 -> vector<8x128xf32>
    %c2_i32_19 = arith.constant 2 : i32
    %57 = tpu.dynamic_rotate %55 by %c2_i32_19 dim 1 : vector<8x128xf32>, i32 -> vector<8x128xf32>
    %c2_i32_20 = arith.constant 2 : i32
    %58 = vector.broadcast %c2_i32_20 : i32 to vector<8x128xi32>
    %59 = arith.andi %5, %58 : vector<8x128xi32>
    %c0_i32_21 = arith.constant 0 : i32
    %60 = vector.broadcast %c0_i32_21 : i32 to vector<8x128xi32>
    %61 = arith.cmpi eq, %59, %60 : vector<8x128xi32>
    %62 = arith.select %61, %56, %57 : vector<8x128xi1>, vector<8x128xf32>
    %63 = arith.addf %55, %62 : vector<8x128xf32>
    %c124_i32_22 = arith.constant 124 : i32
    %64 = tpu.dynamic_rotate %63 by %c124_i32_22 dim 1 : vector<8x128xf32>, i32 -> vector<8x128xf32>
    %c4_i32_23 = arith.constant 4 : i32
    %65 = tpu.dynamic_rotate %63 by %c4_i32_23 dim 1 : vector<8x128xf32>, i32 -> vector<8x128xf32>
    %c4_i32_24 = arith.constant 4 : i32
    %66 = vector.broadcast %c4_i32_24 : i32 to vector<8x128xi32>
    %67 = arith.andi %5, %66 : vector<8x128xi32>
    %c0_i32_25 = arith.constant 0 : i32
    %68 = vector.broadcast %c0_i32_25 : i32 to vector<8x128xi32>
    %69 = arith.cmpi eq, %67, %68 : vector<8x128xi32>
    %70 = arith.select %69, %64, %65 : vector<8x128xi1>, vector<8x128xf32>
    %71 = arith.addf %63, %70 : vector<8x128xf32>
    %c120_i32_26 = arith.constant 120 : i32
    %72 = tpu.dynamic_rotate %71 by %c120_i32_26 dim 1 : vector<8x128xf32>, i32 -> vector<8x128xf32>
    %c8_i32_27 = arith.constant 8 : i32
    %73 = tpu.dynamic_rotate %71 by %c8_i32_27 dim 1 : vector<8x128xf32>, i32 -> vector<8x128xf32>
    %c8_i32_28 = arith.constant 8 : i32
    %74 = vector.broadcast %c8_i32_28 : i32 to vector<8x128xi32>
    %75 = arith.andi %5, %74 : vector<8x128xi32>
    %c0_i32_29 = arith.constant 0 : i32
    %76 = vector.broadcast %c0_i32_29 : i32 to vector<8x128xi32>
    %77 = arith.cmpi eq, %75, %76 : vector<8x128xi32>
    %78 = arith.select %77, %72, %73 : vector<8x128xi1>, vector<8x128xf32>
    %79 = arith.addf %71, %78 : vector<8x128xf32>
    %c112_i32_30 = arith.constant 112 : i32
    %80 = tpu.dynamic_rotate %79 by %c112_i32_30 dim 1 : vector<8x128xf32>, i32 -> vector<8x128xf32>
    %c16_i32_31 = arith.constant 16 : i32
    %81 = tpu.dynamic_rotate %79 by %c16_i32_31 dim 1 : vector<8x128xf32>, i32 -> vector<8x128xf32>
    %c16_i32_32 = arith.constant 16 : i32
    %82 = vector.broadcast %c16_i32_32 : i32 to vector<8x128xi32>
    %83 = arith.andi %5, %82 : vector<8x128xi32>
    %c0_i32_33 = arith.constant 0 : i32
    %84 = vector.broadcast %c0_i32_33 : i32 to vector<8x128xi32>
    %85 = arith.cmpi eq, %83, %84 : vector<8x128xi32>
    %86 = arith.select %85, %80, %81 : vector<8x128xi1>, vector<8x128xf32>
    %87 = arith.addf %79, %86 : vector<8x128xf32>
    %88 = math.log %87 : vector<8x128xf32>
    %89 = arith.addf %45, %88 : vector<8x128xf32>
    %90 = vector.extract_strided_slice %4 {offsets = [0, 0], sizes = [8, 1], strides = [1, 1]} : vector<8x4xi32> to vector<8x1xi32>
    %91 = vector.broadcast %90 : vector<8x1xi32> to vector<8x128xi32>
    %92 = arith.cmpi eq, %5, %91 : vector<8x128xi32>
    %93 = vector.extract_strided_slice %4 {offsets = [0, 1], sizes = [8, 1], strides = [1, 1]} : vector<8x4xi32> to vector<8x1xi32>
    %94 = vector.broadcast %93 : vector<8x1xi32> to vector<8x128xi32>
    %95 = arith.cmpi eq, %5, %94 : vector<8x128xi32>
    %96 = arith.ori %92, %95 : vector<8x128xi1>
    %97 = vector.extract_strided_slice %4 {offsets = [0, 2], sizes = [8, 1], strides = [1, 1]} : vector<8x4xi32> to vector<8x1xi32>
    %98 = vector.broadcast %97 : vector<8x1xi32> to vector<8x128xi32>
    %99 = arith.cmpi eq, %5, %98 : vector<8x128xi32>
    %100 = arith.ori %96, %99 : vector<8x128xi1>
    %101 = vector.extract_strided_slice %4 {offsets = [0, 3], sizes = [8, 1], strides = [1, 1]} : vector<8x4xi32> to vector<8x1xi32>
    %102 = vector.broadcast %101 : vector<8x1xi32> to vector<8x128xi32>
    %103 = arith.cmpi eq, %5, %102 : vector<8x128xi32>
    %104 = arith.ori %100, %103 : vector<8x128xi1>
    %c1_i32_34 = arith.constant 1 : i32
    %105 = arith.muli %arg0, %c1_i32_34 : i32
    %106 = arith.addi %105, %arg1 : i32
    %c8_i32_35 = arith.constant 8 : i32
    %107 = arith.muli %106, %c8_i32_35 : i32
    %108 = tpu.iota {dimensions = array<i32: 0>} : vector<8x1xi32>
    %109 = vector.broadcast %107 : i32 to vector<8x1xi32>
    %110 = arith.addi %109, %108 : vector<8x1xi32>
    %c8_i32_36 = arith.constant 8 : i32
    %111 = vector.broadcast %c8_i32_36 : i32 to vector<8x1xi32>
    %112 = arith.cmpi slt, %110, %111 : vector<8x1xi32>
    %cst = arith.constant 0.000000e+00 : f32
    %113 = vector.shape_cast %112 : vector<8x1xi1> to vector<8x1xi1>
    %114 = vector.broadcast %113 : vector<8x1xi1> to vector<8x128xi1>
    %115 = vector.broadcast %cst : f32 to vector<8x128xf32>
    %116 = arith.select %114, %89, %115 : vector<8x128xi1>, vector<8x128xf32>
    %117 = vector.broadcast %112 : vector<8x1xi1> to vector<8x128xi1>
    %118 = arith.andi %117, %104 : vector<8x128xi1>
    %cst_37 = arith.constant 0.000000e+00 : f32
    %119 = vector.broadcast %cst_37 : f32 to vector<8x128xf32>
    %120 = arith.select %118, %3, %119 : vector<8x128xi1>, vector<8x128xf32>
    %cst_38 = arith.constant 3.125000e-02 : f32
    %121 = vector.broadcast %cst_38 : f32 to vector<8x128xf32>
    %122 = arith.mulf %116, %121 : vector<8x128xf32>
    %123 = arith.subf %122, %120 : vector<8x128xf32>
    %cst_39 = arith.constant dense<0.000000e+00> : vector<128xf32>
    %124 = vector.multi_reduction <add>, %123, %cst_39 [0] : vector<8x128xf32> to vector<128xf32>
    %125 = vector.shape_cast %124 : vector<128xf32> to vector<1x128xf32>
    %c0_40 = arith.constant 0 : index
    %c0_41 = arith.constant 0 : index
    %126 = vector.load %arg4[%c0_40, %c0_41] : memref<8x128xf32, #tpu.memory_space<vmem>>, vector<8x128xf32>
    %127 = vector.broadcast %125 : vector<1x128xf32> to vector<8x128xf32>
    %128 = arith.addf %126, %127 : vector<8x128xf32>
    %c0_42 = arith.constant 0 : index
    %c0_43 = arith.constant 0 : index
    %129 = vector.load %arg4[%c0_42, %c0_43] : memref<8x128xf32, #tpu.memory_space<vmem>>, vector<8x128xf32>
    tpu.vector_store %arg4[%c0_42, %c0_43], %128 {strides = array<i32>} : memref<8x128xf32, #tpu.memory_space<vmem>>, vector<8x128xf32>,
    return
  }
  func.func @transform_0(%arg0: i32, %arg1: i32) -> (i32, i32) {
    %c1_i32 = arith.constant 1 : i32
    %0 = arith.muli %arg0, %c1_i32 : i32
    %1 = arith.addi %0, %arg1 : i32
    %c0_i32 = arith.constant 0 : i32
    %2 = arith.minsi %1, %c0_i32 : i32
    %c0_i32_0 = arith.constant 0 : i32
    %c0_i32_1 = arith.constant 0 : i32
    return %2, %c0_i32_0 : i32, i32
  }
  func.func @transform_1(%arg0: i32, %arg1: i32) -> (i32, i32) {
    %c1_i32 = arith.constant 1 : i32
    %0 = arith.muli %arg0, %c1_i32 : i32
    %1 = arith.addi %0, %arg1 : i32
    %c0_i32 = arith.constant 0 : i32
    %2 = arith.minsi %1, %c0_i32 : i32
    %c0_i32_0 = arith.constant 0 : i32
    %c0_i32_1 = arith.constant 0 : i32
    return %2, %c0_i32_0 : i32, i32
  }
  func.func @transform_2(%arg0: i32, %arg1: i32) -> (i32, i32) {
    %c0_i32 = arith.constant 0 : i32
    %c0_i32_0 = arith.constant 0 : i32
    return %arg0, %c0_i32 : i32, i32
  }
}

</mosaic_0001>

<bundles_post_ra>
// kernel: tpu_custom_call.1
= control target key start
LH: loop header
LB: loop body
LE: loop exit
PB: predicated region body
PF: predicated region fallthrough
CT: control target
= control target key end

     0   :  { %s393_s0 = inlined_call_operand.vmem [shape: f32[8,128], index: 0, kind: input, shape index: {}]   ;;  %s394_s1 = inlined_call_operand.vmem [shape: s32[8,4], index: 1, kind: input, shape index: {}]   ;;  %s395_s2 = inlined_call_operand.hbm [shape: f32[8,128], index: 2, kind: output, shape index: {}]  }
   0x1   :  { %v300_v0 = vld [vmem:[%s393_s0] sm:$0xff] }
   0x2   :  { %7 = vsyncpa [#allocation3], 0  ;;  %s267_s11 = smov 127   ;;  %s268_s12 = smov 1   ;;  %v73_v1 = vlaneseq  ;;  %v277_v44 = vmov 1   ;;  %v278_v45 = vmov 0  }
   0x3   :  { %75 = vrot.lane.b32.xlu0 %v300_v0, %s267_s11  ;;  %s269_s0 = smov 126   ;;  %s270_s13 = smov 2   ;;  %236 = vset.pattern.permute.xlu1 %v277_v44  ;;  %v72_v54 = vld [vmem:[%s394_s1] sm:$0xff]  ;;  %v279_v55 = vmov 2   ;;  %v280_v56 = vmov 3  }
   0x4   :  { %v306_v2 = vand.u32 127, %v73_v1  ;;  %s271_s14 = smov 4   ;;  %s272_s15 = smov 124   ;;  %235 = vset.pattern.permute.xlu0 %v278_v45 }
   0x5   :  { %s273_s16 = smov 8   ;;  %s274_s17 = smov 120  }
   0x6   :  { %v79_v3 = vand.u32 1, %v306_v2  ;;  %v87_v9 = vand.u32 2, %v306_v2  ;;  %v95_v15 = vand.u32 4, %v306_v2  ;;  %v103_v21 = vand.u32 8, %v306_v2  ;;  %s275_s18 = smov 16   ;;  %s276_s19 = smov 112  }
   0x7   :  { %77 = vrot.lane.b32.xlu0 %v300_v0, %s268_s12  ;;  %v111_v27 = vand.u32 16, %v306_v2  ;;  %s281_s1 = smov [#allocation2]  }
   0x8   :  { %vm309_vm0 = vcmp.eq.s32.totalorder %v79_v3, 0  ;;  %vm319_vm1 = vcmp.eq.s32.totalorder %v87_v9, 0  ;;  %vm328_vm2 = vcmp.eq.s32.totalorder %v95_v15, 0  ;;  %vm337_vm3 = vcmp.eq.s32.totalorder %v103_v21, 0  ;;  %s199_s22 = sshll.u32 %s281_s1, 4  ;;  %s200_s22 = int_to_ptr.vmem [resolvable:$true] %s199_s22 }
   0x9   :  { %vm346_vm4 = vcmp.eq.s32.totalorder %v111_v27, 0  ;;  %s243_s23 = scalar_lea.vmem %s200_s22, 128  ;;  %p248_p1 = scmp.lt.s32.totalorder %s200_s22, %s200_s22 }
   0xa   :  { %p244_p0 = scmp.ne.s32.totalorder %s200_s22, %s243_s23  ;;  %p249_p2 = scmp.lt.s32.totalorder %s243_s23, %s243_s23 }
   0xc   :  { %p250_p3 = por %p249_p2, %p248_p1 }
   0xe   :  { %p251_p4 = pnand %p250_p3, %p244_p0 }
  0x75   :  { %v76_v4 = vpop.permute.xlu0 %75 }
  0x79   :  { %v78_v6 = vpop.permute.xlu0 %77 }
  0x7a   :  { %v81_v7 = vsel %vm309_vm0, %v76_v4, %v78_v6 }
  0x7b   :  { %v82_v8 = vmax.f32 %v300_v0, %v81_v7 }
  0x7d   :  { %83 = vrot.lane.b32.xlu1 %v82_v8, %s269_s0 }
  0x81   :  { %85 = vrot.lane.b32.xlu1 %v82_v8, %s270_s13 }
  0xef   :  { %v84_v10 = vpop.permute.xlu1 %83 }
  0xf3   :  { %v86_v12 = vpop.permute.xlu1 %85 }
  0xf4   :  { %v89_v13 = vsel %vm319_vm1, %v84_v10, %v86_v12 }
  0xf5   :  { %v90_v14 = vmax.f32 %v82_v8, %v89_v13 }
  0xf7   :  { %93 = vrot.lane.b32.xlu1 %v90_v14, %s271_s14  ;;  %91 = vrot.lane.b32.xlu0 %v90_v14, %s272_s15 }
 0x169   :  { %v94_v17 = vpop.permute.xlu1 %93  ;;  %v92_v18 = vpop.permute.xlu0 %91 }
 0x16a   :  { %v97_v19 = vsel %vm328_vm2, %v92_v18, %v94_v17 }
 0x16b   :  { %v98_v20 = vmax.f32 %v90_v14, %v97_v19 }
 0x16d   :  { %101 = vrot.lane.b32.xlu1 %v98_v20, %s273_s16  ;;  %99 = vrot.lane.b32.xlu0 %v98_v20, %s274_s17 }
 0x1df   :  { %v102_v23 = vpop.permute.xlu1 %101  ;;  %v100_v24 = vpop.permute.xlu0 %99 }
 0x1e0   :  { %v105_v25 = vsel %vm337_vm3, %v100_v24, %v102_v23 }
 0x1e1   :  { %v106_v26 = vmax.f32 %v98_v20, %v105_v25 }
 0x1e3   :  { %109 = vrot.lane.b32.xlu1 %v106_v26, %s275_s18  ;;  %107 = vrot.lane.b32.xlu0 %v106_v26, %s276_s19 }
 0x255   :  { %v110_v29 = vpop.permute.xlu1 %109  ;;  %v108_v30 = vpop.permute.xlu0 %107 }
 0x256   :  { %v113_v31 = vsel %vm346_vm4, %v108_v30, %v110_v29 }
 0x257   :  { %v114_v32 = vmax.f32 %v106_v26, %v113_v31 }
 0x259   :  { %v115_v33 = vsub.f32 %v300_v0, %v114_v32 }
 0x25b   :  { %v116_v34 = vmul.f32 1.442695, %v115_v33 }
 0x25d   :  { %239 = vpow2.f32 %v116_v34 }
 0x267   :  { %v240_v35 = vpop.eup %239 }
 0x268   :  { %120 = vrot.lane.b32.xlu1 %v240_v35, %s268_s12  ;;  %118 = vrot.lane.b32.xlu0 %v240_v35, %s267_s11 }
 0x2da   :  { %v121_v36 = vpop.permute.xlu1 %120  ;;  %v119_v37 = vpop.permute.xlu0 %118 }
 0x2db   :  { %v122_v38 = vsel %vm309_vm0, %v119_v37, %v121_v36 }
 0x2dc   :  { %v123_v39 = vadd.f32 %v240_v35, %v122_v38 }
 0x2de   :  { %126 = vrot.lane.b32.xlu1 %v123_v39, %s270_s13  ;;  %124 = vrot.lane.b32.xlu0 %v123_v39, %s269_s0 }
 0x350   :  { %v127_v40 = vpop.permute.xlu1 %126  ;;  %v125_v41 = vpop.permute.xlu0 %124 }
 0x351   :  { %v128_v42 = vsel %vm319_vm1, %v125_v41, %v127_v40 }
 0x352   :  { %v129_v43 = vadd.f32 %v128_v42, %v123_v39 }
 0x354   :  { %132 = vrot.lane.b32.xlu1 %v129_v43, %s271_s14  ;;  %130 = vrot.lane.b32.xlu0 %v129_v43, %s272_s15 }
 0x3c6   :  { %v133_v46 = vpop.permute.xlu1 %132  ;;  %v131_v47 = vpop.permute.xlu0 %130 }
 0x3c7   :  { %v134_v48 = vsel %vm328_vm2, %v131_v47, %v133_v46 }
 0x3c8   :  { %v135_v49 = vadd.f32 %v134_v48, %v129_v43 }
 0x3ca   :  { %138 = vrot.lane.b32.xlu1 %v135_v49, %s273_s16  ;;  %136 = vrot.lane.b32.xlu0 %v135_v49, %s274_s17 }
 0x43c   :  { %v139_v50 = vpop.permute.xlu1 %138  ;;  %v137_v51 = vpop.permute.xlu0 %136 }
 0x43d   :  { %v140_v52 = vsel %vm337_vm3, %v137_v51, %v139_v50 }
 0x43e   :  { %v141_v53 = vadd.f32 %v140_v52, %v135_v49 }
 0x440   :  { %144 = vrot.lane.b32.xlu1 %v141_v53, %s275_s18  ;;  %142 = vrot.lane.b32.xlu0 %v141_v53, %s276_s19 }
 0x444   :  { %156 = vperm.xlu1 %236, %v72_v54   ;;  %152 = vperm.xlu0 %235, %v72_v54  }
 0x448   :  { %237 = vset.pattern.permute.xlu1 %v279_v55  ;;  %238 = vset.pattern.permute.xlu0 %v280_v56 }
 0x449   :  { %161 = vperm.xlu1 %237, %v72_v54   ;;  %166 = vperm.xlu0 %238, %v72_v54  }
 0x4b2   :  { %v145_v57 = vpop.permute.xlu1 %144  ;;  %v143_v58 = vpop.permute.xlu0 %142 }
 0x4b3   :  { %v146_v59 = vsel %vm346_vm4, %v143_v58, %v145_v57 }
 0x4b4   :  { %v147_v60 = vadd.f32 %v146_v59, %v141_v53 }
 0x4b6   :  { %241 = vlog2.f32 %v147_v60 }
 0x4c0   :  { %v242_v61 = vpop.eup %241 }
 0x4c1   :  { %v149_v62 = vmul.f32 0.6931472, %v242_v61 }
 0x4c3   :  { %v157_v63 = vpop.permute.xlu1 %156  ;;  %v153_v1 = vpop.permute.xlu0 %152  ;;  %v150_v3 = vadd.f32 %v149_v62, %v114_v32 }
 0x4c4   :  { %vm158_vm5 = vcmp.eq.s32.totalorder %v306_v2, %v157_v63  ;;  %vm154_vm6 = vcmp.eq.s32.totalorder %v306_v2, %v153_v1 }
 0x4c5   :  { %vm159_vm7 = vmor %vm154_vm6, %vm158_vm5  ;;  %v182_v6 = vmul.f32 0.03125, %v150_v3 }
 0x4c8   :  { %v162_v4 = vpop.permute.xlu1 %161  ;;  %v167_v5 = vpop.permute.xlu0 %166 }
 0x4c9   :  { %vm163_vm8 = vcmp.eq.s32.totalorder %v306_v2, %v162_v4  ;;  %vm168_vm9 = vcmp.eq.s32.totalorder %v306_v2, %v167_v5 }
 0x4ca   :  { %vm164_vm10 = vmor %vm159_vm7, %vm163_vm8 }
 0x4cb   :  { %vm169_vm11 = vmor %vm164_vm10, %vm168_vm9 }
 0x4cc   :  { %v181_v7 = vsel %vm169_vm11, %v300_v0, 0.0 }
 0x4cd   :  { %v183_v8 = vsub.f32 %v182_v6, %v181_v7 }
 0x4cf   :  { %v184_v9 = vrot.slane %v183_v8, 4 }
 0x4d1   :  { %v185_v10 = vadd.f32 %v184_v9, %v183_v8 }
 0x4d3   :  { %v186_v11 = vrot.slane %v185_v10, 2 }
 0x4d5   :  { %v187_v12 = vadd.f32 %v186_v11, %v185_v10 }
 0x4d7   :  { %v188_v13 = vrot.slane %v187_v12, 1 }
 0x4d9   :  { %v189_v14 = vadd.f32 %v188_v13, %v187_v12 }
 0x4db   :  { %192 = vst [vmem:[#allocation2] sm:$0xff] %v189_v14 }
 0x4dc   :  { %254 = shalt.err (!%p251_p4)
}
 0x4dd   :  { %s255_s26 = scalar_lea.hbm %s395_s2, 128 }
 0x4de   :  { %p256_p5 = scmp.ne.s32.totalorder %s395_s2, %s255_s26  ;;  %p259_p6 = scmp.lt.u32.totalorder %s255_s26, %s395_s2 }
 0x4e0   :  { %p261_p7 = pnand %p259_p6, %p256_p5 }
 0x4e2   :  { %264 = shalt.err (!%p261_p7)
}
 0x4e3   :  { %202 = dma.vmem_to_hbm [thread:$0]  %s200_s22, 128, %s395_s2, [#allocation3]  }
 0x4e4   :  { %265 = dma.done.wait [#allocation3], 128  }
 0x4e5   :  { %266 = vsyncadd [#allocation3], 4294967168 }
 0x4e6   :  { %206 = vsyncpa [#allocation3], 1 }

</bundles_post_ra>
